<compile_context>
chip_gen: v5e
topology: v5e:2x2
jax: 0.10.0
libtpu: 0.0.40
codegen_flags: <defaults>
</compile_context>

<pallas_src>
import jax
import jax.numpy as jnp
from jax.experimental import pallas as pl
from jax.experimental.pallas import tpu as pltpu

SELU_ALPHA = 1.6732632423543772848170429916717
SELU_SCALE = 1.0507009873554804934193349852946


def _selu(v):
    # Matches the in-file reference; PyTorch uses expm1 (difference << 1e-5).
    return SELU_SCALE * jnp.where(v > 0, v, SELU_ALPHA * (jnp.exp(v) - 1.0))


def transformer_kernel(x_ref, w1_ref, b1_ref, w2_ref, b2_ref, w3_ref, b3_ref,
                       o_ref):
    # x_ref: (Cin, tm) channel-major tile; weights are full (Cout, Cin);
    # biases are (Cout, 1) and broadcast along the lane (pixel) axis.
    x = x_ref[...]  # f32
    y = _selu(jnp.dot(w1_ref[...], x, preferred_element_type=jnp.float32)
              + b1_ref[...])
    y = _selu(jnp.dot(w2_ref[...], y, preferred_element_type=jnp.float32)
              + b2_ref[...])
    y = _selu(jnp.dot(w3_ref[...], y, preferred_element_type=jnp.float32)
              + b3_ref[...])
    o_ref[...] = y.astype(o_ref.dtype)


def _round_up(v, m):
    return ((v + m - 1) // m) * m


def transformer_forward(x_nchw, params, *, tm=8192):
    """x_nchw: (N, Cin, H, W) float32.  Returns (N, Cout, H, W) float32."""
    w1, b1, w2, b2, w3, b3 = params
    N, Cin, H, W = x_nchw.shape
    Cmid = w1.shape[0]
    Cout = w3.shape[0]

    # NCHW -> (N, Cin, P) is a free reshape (no transpose, no extra HBM pass).
    P = H * W
    x3 = x_nchw.reshape(N, Cin, P)

    p128 = _round_up(P, 128)

    # Lane tile: multiple of 128, at most the (128-rounded) pixel count.
    tm_eff = max(128, min((tm // 128) * 128, p128))

    # VMEM budget guard (generic channel counts; never binds at tiny C):
    # double-buffered in/out tiles + live f32 intermediates, per lane.
    cin_p, cmid_p, cout_p = _round_up(Cin, 8), _round_up(Cmid, 8), _round_up(Cout, 8)
    bytes_per_lane = 4 * (2 * (cin_p + cout_p)      # double-buffered in + out
                          + cmid_p + 2 * cout_p)    # live intermediates
    vmem_budget = 40 << 20                          # safe even on v7x (64 MiB)
    tm_cap = max(128, (vmem_budget // bytes_per_lane) // 128 * 128)
    tm_eff = min(tm_eff, tm_cap)

    # v7x has 2 TensorCores: with N == 1 make sure there are >= 2 pixel tiles
    # so the second core is not idle (no effect on v5e/v6e).
    if N == 1 and p128 >= 256:
        half = max(128, _round_up((P + 1) // 2, 128))
        tm_eff = min(tm_eff, half)

    # No pad / no output slice: cdiv grid, Pallas masks the ragged last tile.
    grid = (N, pl.cdiv(P, tm_eff))

    weight_bytes = 4 * (cmid_p * cin_p + cout_p * cmid_p + cout_p * cout_p
                        + cmid_p + 2 * cout_p)
    vmem_limit = int(min(48 << 20,
                         max(32 << 20,
                             2 * bytes_per_lane * tm_eff + 4 * weight_bytes)))

    out3 = pl.pallas_call(
        transformer_kernel,
        out_shape=jax.ShapeDtypeStruct((N, Cout, P), jnp.float32),
        grid_spec=pltpu.PrefetchScalarGridSpec(
            num_scalar_prefetch=0,
            grid=grid,
            in_specs=[
                pl.BlockSpec((pl.Squeezed(), Cin, tm_eff),
                             lambda n, i: (n, 0, i)),
                pl.BlockSpec((Cmid, Cin), lambda n, i: (0, 0)),
                pl.BlockSpec((Cmid, 1), lambda n, i: (0, 0)),
                pl.BlockSpec((Cout, Cmid), lambda n, i: (0, 0)),
                pl.BlockSpec((Cout, 1), lambda n, i: (0, 0)),
                pl.BlockSpec((Cout, Cout), lambda n, i: (0, 0)),
                pl.BlockSpec((Cout, 1), lambda n, i: (0, 0)),
            ],
            out_specs=pl.BlockSpec((pl.Squeezed(), Cout, tm_eff),
                                   lambda n, i: (n, 0, i)),
        ),
        compiler_params=pltpu.CompilerParams(
            dimension_semantics=("parallel", "parallel"),
            vmem_limit_bytes=vmem_limit),
    )(x3, w1, b1, w2, b2, w3, b3)

    return out3.reshape(N, Cout, H, W)


def init_params(key, inp_channel, mid_channel, out_channel):
    """Deterministic synthetic init; conv weights stored channel-major as
    (Cout, Cin) (PyTorch (Cout, Cin, 1, 1) weight, squeezed); bias (Cout, 1)."""
    ks = jax.random.split(key, 6)

    def conv_init(kw, kb, cin, cout):
        bound = 1.0 / jnp.sqrt(cin)
        w = jax.random.uniform(kw, (cout, cin), jnp.float32, -bound, bound)
        b = jax.random.uniform(kb, (cout, 1), jnp.float32, -bound, bound)
        return w, b

    w1, b1 = conv_init(ks[0], ks[1], inp_channel, mid_channel)
    w2, b2 = conv_init(ks[2], ks[3], mid_channel, out_channel)
    w3, b3 = conv_init(ks[4], ks[5], out_channel, out_channel)
    return (w1, b1, w2, b2, w3, b3)


def reference_forward(x_nchw, params):
    w1, b1, w2, b2, w3, b3 = params

    def layer(x, w, b):
        y = jnp.einsum('oi,nihw->nohw', w, x) + b[None, :, :, None]
        return _selu(y)

    y = layer(x_nchw, w1, b1)
    y = layer(y, w2, b2)
    y = layer(y, w3, b3)
    return y


if __name__ == "__main__":
    key = jax.random.PRNGKey(0)
    k_x, k_p = jax.random.split(key)

    # Small shapes consistent with the module: NCHW input.
    N, Cin, H, W = 2, 4, 16, 16
    Cmid, Cout = 8, 8

    x = jax.random.normal(k_x, (N, Cin, H, W), jnp.float32)
    params = init_params(k_p, Cin, Cmid, Cout)

    out = transformer_forward(x, params)
    out = jax.block_until_ready(out)

    ref = reference_forward(x, params)
    assert out.shape == (N, Cout, H, W)
    assert jnp.allclose(out, ref, atol=1e-5, rtol=1e-5)

    print("KERNEL_OK")
</pallas_src>

<mosaic_0001>
module attributes {stable_mosaic.version = 11 : i64} {
  func.func @transformer_kernel(%arg0: i32, %arg1: i32, %arg2: memref<1x4x256xf32, #tpu.memory_space<vmem>>, %arg3: memref<8x4xf32, #tpu.memory_space<vmem>>, %arg4: memref<8x1xf32, #tpu.memory_space<vmem>>, %arg5: memref<8x8xf32, #tpu.memory_space<vmem>>, %arg6: memref<8x1xf32, #tpu.memory_space<vmem>>, %arg7: memref<8x8xf32, #tpu.memory_space<vmem>>, %arg8: memref<8x1xf32, #tpu.memory_space<vmem>>, %arg9: memref<1x8x256xf32, #tpu.memory_space<vmem>>) attributes {dimension_semantics = [#tpu.dimension_semantics<parallel>, #tpu.dimension_semantics<parallel>], iteration_bounds = array<i64: 2, 1>, scalar_prefetch = 0 : i64, scratch_operands = 0 : i64, tpu.core_type = #tpu.core_type<tc>, window_params = [{transform_indices = @transform_0, window_bounds = array<i64: 1, 4, 256>}, {pipeline_mode = #tpu.pipeline_mode<synchronous>, transform_indices = @transform_1, window_bounds = array<i64: 8, 4>}, {pipeline_mode = #tpu.pipeline_mode<synchronous>, transform_indices = @transform_2, window_bounds = array<i64: 8, 1>}, {pipeline_mode = #tpu.pipeline_mode<synchronous>, transform_indices = @transform_3, window_bounds = array<i64: 8, 8>}, {pipeline_mode = #tpu.pipeline_mode<synchronous>, transform_indices = @transform_4, window_bounds = array<i64: 8, 1>}, {pipeline_mode = #tpu.pipeline_mode<synchronous>, transform_indices = @transform_5, window_bounds = array<i64: 8, 8>}, {pipeline_mode = #tpu.pipeline_mode<synchronous>, transform_indices = @transform_6, window_bounds = array<i64: 8, 1>}, {transform_indices = @transform_7, window_bounds = array<i64: 1, 8, 256>}]} {
    %c0 = arith.constant 0 : index
    %c0_0 = arith.constant 0 : index
    %c0_1 = arith.constant 0 : index
    %0 = vector.load %arg2[%c0, %c0_0, %c0_1] : memref<1x4x256xf32, #tpu.memory_space<vmem>>, vector<1x4x256xf32>
    %1 = vector.shape_cast %0 : vector<1x4x256xf32> to vector<4x256xf32>
    %c0_2 = arith.constant 0 : index
    %c0_3 = arith.constant 0 : index
    %2 = vector.load %arg3[%c0_2, %c0_3] : memref<8x4xf32, #tpu.memory_space<vmem>>, vector<8x4xf32>
    %cst = arith.constant dense<0.000000e+00> : vector<8x256xf32>
    %3 = tpu.matmul %2, %1, %cst {dimension_numbers = #tpu.dot_dimension_numbers<[1], [0], [0], [1], [0, 0, 1, 1], [], []>} : vector<8x4xf32>, vector<4x256xf32>, vector<8x256xf32> -> vector<8x256xf32>
    %c0_4 = arith.constant 0 : index
    %c0_5 = arith.constant 0 : index
    %4 = vector.load %arg4[%c0_4, %c0_5] : memref<8x1xf32, #tpu.memory_space<vmem>>, vector<8x1xf32>
    %5 = vector.broadcast %4 : vector<8x1xf32> to vector<8x256xf32>
    %6 = arith.addf %3, %5 : vector<8x256xf32>
    %cst_6 = arith.constant 0.000000e+00 : f32
    %7 = vector.broadcast %cst_6 : f32 to vector<8x256xf32>
    %8 = arith.cmpf ogt, %6, %7 : vector<8x256xf32>
    %9 = math.exp %6 : vector<8x256xf32>
    %cst_7 = arith.constant 1.000000e+00 : f32
    %10 = vector.broadcast %cst_7 : f32 to vector<8x256xf32>
    %11 = arith.subf %9, %10 : vector<8x256xf32>
    %cst_8 = arith.constant 1.67326319 : f32
    %12 = vector.broadcast %cst_8 : f32 to vector<8x256xf32>
    %13 = arith.mulf %12, %11 : vector<8x256xf32>
    %14 = arith.select %8, %6, %13 : vector<8x256xi1>, vector<8x256xf32>
    %cst_9 = arith.constant 1.05070102 : f32
    %15 = vector.broadcast %cst_9 : f32 to vector<8x256xf32>
    %16 = arith.mulf %15, %14 : vector<8x256xf32>
    %c0_10 = arith.constant 0 : index
    %c0_11 = arith.constant 0 : index
    %17 = vector.load %arg5[%c0_10, %c0_11] : memref<8x8xf32, #tpu.memory_space<vmem>>, vector<8x8xf32>
    %cst_12 = arith.constant dense<0.000000e+00> : vector<8x256xf32>
    %18 = tpu.matmul %17, %16, %cst_12 {dimension_numbers = #tpu.dot_dimension_numbers<[1], [0], [0], [1], [0, 0, 1, 1], [], []>} : vector<8x8xf32>, vector<8x256xf32>, vector<8x256xf32> -> vector<8x256xf32>
    %c0_13 = arith.constant 0 : index
    %c0_14 = arith.constant 0 : index
    %19 = vector.load %arg6[%c0_13, %c0_14] : memref<8x1xf32, #tpu.memory_space<vmem>>, vector<8x1xf32>
    %20 = vector.broadcast %19 : vector<8x1xf32> to vector<8x256xf32>
    %21 = arith.addf %18, %20 : vector<8x256xf32>
    %cst_15 = arith.constant 0.000000e+00 : f32
    %22 = vector.broadcast %cst_15 : f32 to vector<8x256xf32>
    %23 = arith.cmpf ogt, %21, %22 : vector<8x256xf32>
    %24 = math.exp %21 : vector<8x256xf32>
    %cst_16 = arith.constant 1.000000e+00 : f32
    %25 = vector.broadcast %cst_16 : f32 to vector<8x256xf32>
    %26 = arith.subf %24, %25 : vector<8x256xf32>
    %cst_17 = arith.constant 1.67326319 : f32
    %27 = vector.broadcast %cst_17 : f32 to vector<8x256xf32>
    %28 = arith.mulf %27, %26 : vector<8x256xf32>
    %29 = arith.select %23, %21, %28 : vector<8x256xi1>, vector<8x256xf32>
    %cst_18 = arith.constant 1.05070102 : f32
    %30 = vector.broadcast %cst_18 : f32 to vector<8x256xf32>
    %31 = arith.mulf %30, %29 : vector<8x256xf32>
    %c0_19 = arith.constant 0 : index
    %c0_20 = arith.constant 0 : index
    %32 = vector.load %arg7[%c0_19, %c0_20] : memref<8x8xf32, #tpu.memory_space<vmem>>, vector<8x8xf32>
    %cst_21 = arith.constant dense<0.000000e+00> : vector<8x256xf32>
    %33 = tpu.matmul %32, %31, %cst_21 {dimension_numbers = #tpu.dot_dimension_numbers<[1], [0], [0], [1], [0, 0, 1, 1], [], []>} : vector<8x8xf32>, vector<8x256xf32>, vector<8x256xf32> -> vector<8x256xf32>
    %c0_22 = arith.constant 0 : index
    %c0_23 = arith.constant 0 : index
    %34 = vector.load %arg8[%c0_22, %c0_23] : memref<8x1xf32, #tpu.memory_space<vmem>>, vector<8x1xf32>
    %35 = vector.broadcast %34 : vector<8x1xf32> to vector<8x256xf32>
    %36 = arith.addf %33, %35 : vector<8x256xf32>
    %cst_24 = arith.constant 0.000000e+00 : f32
    %37 = vector.broadcast %cst_24 : f32 to vector<8x256xf32>
    %38 = arith.cmpf ogt, %36, %37 : vector<8x256xf32>
    %39 = math.exp %36 : vector<8x256xf32>
    %cst_25 = arith.constant 1.000000e+00 : f32
    %40 = vector.broadcast %cst_25 : f32 to vector<8x256xf32>
    %41 = arith.subf %39, %40 : vector<8x256xf32>
    %cst_26 = arith.constant 1.67326319 : f32
    %42 = vector.broadcast %cst_26 : f32 to vector<8x256xf32>
    %43 = arith.mulf %42, %41 : vector<8x256xf32>
    %44 = arith.select %38, %36, %43 : vector<8x256xi1>, vector<8x256xf32>
    %cst_27 = arith.constant 1.05070102 : f32
    %45 = vector.broadcast %cst_27 : f32 to vector<8x256xf32>
    %46 = arith.mulf %45, %44 : vector<8x256xf32>
    %c0_28 = arith.constant 0 : index
    %c0_29 = arith.constant 0 : index
    %c0_30 = arith.constant 0 : index
    %47 = vector.load %arg9[%c0_28, %c0_29, %c0_30] : memref<1x8x256xf32, #tpu.memory_space<vmem>>, vector<1x8x256xf32>
    %48 = vector.shape_cast %47 : vector<1x8x256xf32> to vector<8x256xf32>
    %49 = vector.shape_cast %46 : vector<8x256xf32> to vector<1x8x256xf32>
    tpu.vector_store %arg9[%c0_28, %c0_29, %c0_30], %49 {strides = array<i32>} : memref<1x8x256xf32, #tpu.memory_space<vmem>>, vector<1x8x256xf32>,
    return
  }
  func.func @transform_0(%arg0: i32, %arg1: i32) -> (i32, i32, i32) {
    %c0_i32 = arith.constant 0 : i32
    %c0_i32_0 = arith.constant 0 : i32
    return %arg0, %c0_i32, %arg1 : i32, i32, i32
  }
  func.func @transform_1(%arg0: i32, %arg1: i32) -> (i32, i32) {
    %c0_i32 = arith.constant 0 : i32
    %c0_i32_0 = arith.constant 0 : i32
    %c0_i32_1 = arith.constant 0 : i32
    return %c0_i32, %c0_i32_0 : i32, i32
  }
  func.func @transform_2(%arg0: i32, %arg1: i32) -> (i32, i32) {
    %c0_i32 = arith.constant 0 : i32
    %c0_i32_0 = arith.constant 0 : i32
    %c0_i32_1 = arith.constant 0 : i32
    return %c0_i32, %c0_i32_0 : i32, i32
  }
  func.func @transform_3(%arg0: i32, %arg1: i32) -> (i32, i32) {
    %c0_i32 = arith.constant 0 : i32
    %c0_i32_0 = arith.constant 0 : i32
    %c0_i32_1 = arith.constant 0 : i32
    return %c0_i32, %c0_i32_0 : i32, i32
  }
  func.func @transform_4(%arg0: i32, %arg1: i32) -> (i32, i32) {
    %c0_i32 = arith.constant 0 : i32
    %c0_i32_0 = arith.constant 0 : i32
    %c0_i32_1 = arith.constant 0 : i32
    return %c0_i32, %c0_i32_0 : i32, i32
  }
  func.func @transform_5(%arg0: i32, %arg1: i32) -> (i32, i32) {
    %c0_i32 = arith.constant 0 : i32
    %c0_i32_0 = arith.constant 0 : i32
    %c0_i32_1 = arith.constant 0 : i32
    return %c0_i32, %c0_i32_0 : i32, i32
  }
  func.func @transform_6(%arg0: i32, %arg1: i32) -> (i32, i32) {
    %c0_i32 = arith.constant 0 : i32
    %c0_i32_0 = arith.constant 0 : i32
    %c0_i32_1 = arith.constant 0 : i32
    return %c0_i32, %c0_i32_0 : i32, i32
  }
  func.func @transform_7(%arg0: i32, %arg1: i32) -> (i32, i32, i32) {
    %c0_i32 = arith.constant 0 : i32
    %c0_i32_0 = arith.constant 0 : i32
    return %arg0, %c0_i32, %arg1 : i32, i32, i32
  }
}

</mosaic_0001>

<bundles_post_ra>
// kernel: tpu_custom_call.1
= control target key start
LH: loop header
LB: loop body
LE: loop exit
PB: predicated region body
PF: predicated region fallthrough
CT: control target
= control target key end

     0   :  { %12 = vsyncpa [#allocation3], 0  ;;  %s948_s0 = inlined_call_operand.vmem [shape: f32[2,4,256], index: 0, kind: input, shape index: {}]   ;;  %s949_s1 = inlined_call_operand.vmem [shape: f32[8,4], index: 1, kind: input, shape index: {}]   ;;  %s950_s2 = inlined_call_operand.vmem [shape: f32[8,1], index: 2, kind: input, shape index: {}]   ;;  %s951_s3 = inlined_call_operand.vmem [shape: f32[8,8], index: 3, kind: input, shape index: {}]   ;;  %s952_s4 = inlined_call_operand.vmem [shape: f32[8,1], index: 4, kind: input, shape index: {}]   ;;  %s953_s5 = inlined_call_operand.vmem [shape: f32[8,8], index: 5, kind: input, shape index: {}]   ;;  %s954_s6 = inlined_call_operand.vmem [shape: f32[8,1], index: 6, kind: input, shape index: {}]   ;;  %s955_s7 = inlined_call_operand.hbm [shape: f32[2,8,256], index: 7, kind: output, shape index: {}]  }
   0x1   :  { %14 = vsyncpa [#allocation3 + $0x1], 0  ;;  %s829_s24 = smov 0   ;;  %s831_s25 = smov 0  }
   0x2   :  { %s833_s26 = smov 0   ;;  %s835_s27 = smov 0  }
   0x3   :  { %s837_s28 = smov 0   ;;  %s839_s29 = smov 0  }
   0x4 LB: > { %s609_s30 = sadd.s32 4294967295, %s786_s29   ;;  %s610_s8 = sadd.s32 4294967294, %s786_s29   ;;  %s786_s29 = sphi %s839_s29, %s20_s29   ;;  %s782_s28 = sphi %s837_s28, %s962_s28   ;;  %s778_s27 = sphi %s835_s27, %s961_s27   ;;  %s774_s26 = sphi %s833_s26, %s960_s26   ;;  %s770_s25 = sphi %s831_s25, %s959_s25   ;;  %s766_s24 = sphi %s829_s24, %s958_s24  }
   0x5   : > { %s32_s9 = sadd.s32 1, %s782_s28  ;;  %s195_s10 = sadd.s32 1, %s774_s26 }
   0x6   : > { %p34_p0 = scmp.ge.s32.totalorder %s32_s9, 2  ;;  %p205_p1 = scmp.ne.s32.totalorder %s774_s26, %s770_s25 }
   0x7   : > { %p206_p2 = scmp.eq.s32.totalorder %s609_s30, 1  ;;  %p211_p3 = scmp.ne.s32.totalorder %s770_s25, %s766_s24 }
   0x8   : > { %s964_s9 = smov (%p34_p0, %s32_s9), 0  ;;  %p212_p5 = scmp.eq.s32.totalorder %s610_s8, 1 }
   0x9   : > { %p869_p4 = por %p206_p2, %p205_p1  ;;  %s190_s12 = ssub.s32 %s782_s28, %s964_s9 }
   0xa   : > { %p613_p6 = scmp.ge.s32.totalorder %s786_s29, 1  ;;  %p193_p7 = scmp.eq.s32.totalorder %s190_s12, 0 }
   0xb   : > { %p876_p8 = por %p212_p5, %p211_p3  ;;  %p261_p9 = scmp.lt.s32.totalorder %s786_s29, 3 }
   0xc   : > { %s882_s14 = scalar_select %p193_p7, %s774_s26, %s195_s10  }
   0xd   : > { %p262_p10 = pnand %p613_p6, %p261_p9 }
   0xe   : > { %p298_p11 = scmp.lt.s32.totalorder (!%p262_p10), %s778_s27, 1  ;;  %s294_s19 = sand.u32 (!%p262_p10), 1, %s770_s25  }
   0xf   : > { %265 = sbr.rel (%p262_p10) target bundleno = 478 (0x1de), region = 48  ;;  %s614_s20 = sshll.u32 (!%p262_p10), %s294_s19, 4 }
  0x10   : > { %s296_s8 = scalar_lea.vmem (!%p262_p10), [#allocation2], %s614_s20  ;;  %s728_s20 = scalar_lea.hbm (!%p262_p10), %s955_s7, 32 }
  0x11   : > { %s530_s10 = sshll.u32 (!%p262_p10), %s296_s8, 4  ;;  %s531_s10 = int_to_ptr.vmem [resolvable:$true] %s530_s10 }
  0x14   : > { %v310_v0 = vld [vmem:[%s950_s2] sm:$0xff]  ;;  %v788_v1 = vmov 0   ;;  %s299_s17 = scalar_select %p298_p11, %s778_s27, 1  ;;  %vm324_vm0 = vcmask 1043456   ;;  %vm320_vm1 = vcmask 31744   ;;  %vm390_vm4 = vcmask 64512  }
  0x15   : > { %694 = vset.pattern.permute.xlu0 %v788_v1  ;;  %695 = vset.pattern.permute.xlu1 %v788_v1  ;;  %v384_v3 = vld [vmem:[%s952_s4] sm:$0xff] }
  0x16   : > { %313 = vperm.xlu0 %694, %v310_v0   ;;  %s636_s18 = sshll.u32 %s299_s17, 3  ;;  %v309_v4 = vld [vmem:[%s949_s1] sm:$0xff] }
  0x17   : > { %s305_s21 = scalar_lea.vmem %s948_s0, %s636_s18  ;;  %v383_v23 = vld [vmem:[%s951_s3] sm:$0xff] }
  0x18   : > { %v308_v2 = vld [vmem:[%s305_s21] sm:$0xff]  ;;  %s637_s21 = sshll.u32 %s778_s27, 4  ;;  %s515_s27 = scalar_lea.sflag [#allocation3], %s294_s19 }
  0x19   : > { %317 = vst [vmem:[#allocation1] ss:$2 sm:$0xff] %v308_v2  ;;  %v449_v25 = vld [vmem:[%s954_s6] sm:$0xff]  ;;  %s528_s30 = scalar_lea.hbm %s955_s7, %s637_s21 }
  0x1a   : > { %452 = vperm.xlu1 %695, %v449_v25   ;;  %v448_v42 = vld [vmem:[%s953_s5] sm:$0xff]  ;;  %s532_s12 = sshll.u32 %s528_s30, 4  ;;  %s533_s12 = int_to_ptr.hbm [resolvable:$true] %s532_s12 }
  0x1b   : > { %s722_s15 = sshra.s32 %s533_s12, 4  ;;  %s723_s15 = int_to_ptr.hbm [resolvable:$true] %s722_s15 }
  0x1c   : > { %s724_s16 = scalar_lea.hbm %s723_s15, 16  ;;  %p729_p1 = scmp.lt.s32.totalorder %s723_s15, %s955_s7 }
  0x1d   : > { %p725_p12 = scmp.ne.s32.totalorder %s723_s15, %s724_s16  ;;  %p730_p2 = scmp.lt.s32.totalorder %s728_s20, %s724_s16 }
  0x1e   : > { %387 = vperm.xlu0 %694, %v384_v3  }
  0x1f   : > { %p726_p13 = pnand %p725_p12, %p869_p4  ;;  %p731_p3 = por %p730_p2, %p729_p1 }
  0x20   : > { %v318_v5 = vld.sshfl [vmem:[#allocation1] sm:$0xff pattern:$0x75316420]  ;;  %v319_v6 = vld.sshfl [vmem:[#allocation1 + $0x8] sm:$0xff pattern:$0x75316420] }
  0x21   : > { %617 = vmatpush.msk.msra.mxu0 %vm324_vm0, %v318_v5  ;;  %619 = vmatpush.msk.msra.mxu1 %vm324_vm0, %v319_v6  ;;  %p727_p0 = pneg %p726_p13 }
  0x22   : > { %618 = vmatmul.msk.f32.vlgmr.msra.gmra.mxu0 %vm320_vm1, %v309_v4  ;;  %620 = vmatmul.msk.f32.vlgmr.msra.gmra.mxu1 %vm320_vm1, %v309_v4 }
  0x23   : > { %p732_p5 = pnand %p731_p3, %p727_p0 }
  0x88   : > { %v314_v7 = vpop.permute.xlu0 %313 }
  0x8c   : > { %v453_v44 = vpop.permute.xlu1 %452 }
  0x90   : > { %v388_v26 = vpop.permute.xlu0 %387 }
  0x9f   : > { %v346_v8 = vpop.f32.mrf.mxu0  ;;  %v366_v9 = vpop.f32.mrf.mxu1 }
  0xa0   : > { %v347_v10 = vadd.f32 %v346_v8, %v314_v7  ;;  %v367_v11 = vadd.f32 %v366_v9, %v314_v7 }
  0xa2   : > { %v371_v12 = vmul.f32 1.442695, %v347_v10  ;;  %v373_v13 = vmul.f32 1.442695, %v367_v11  ;;  %vm369_vm2 = vcmp.gt.f32.partialorder %v347_v10, 0.0  ;;  %vm370_vm3 = vcmp.gt.f32.partialorder %v367_v11, 0.0 }
  0xa4   : > { %696 = vpow2.f32 %v371_v12 }
  0xa5   : > { %698 = vpow2.f32 %v373_v13 }
  0xaa   : > { %v697_v14 = vpop.eup %696 }
  0xab   : > { %v699_v15 = vpop.eup %698  ;;  %v621_v16 = vadd.f32 -1.0, %v697_v14 }
  0xac   : > { %v622_v17 = vadd.f32 -1.0, %v699_v15 }
  0xad   : > { %v377_v18 = vmul.f32 1.6732632, %v621_v16 }
  0xae   : > { %v378_v19 = vmul.f32 1.6732632, %v622_v17 }
  0xaf   : > { %v379_v20 = vsel %vm369_vm2, %v347_v10, %v377_v18 }
  0xb0   : > { %v381_v21 = vmul.f32 1.050701, %v379_v20  ;;  %v380_v22 = vsel %vm370_vm3, %v367_v11, %v378_v19 }
  0xb1   : > { %v382_v24 = vmul.f32 1.050701, %v380_v22 }
  0xb2   : > { %409 = vmatpush.msra.mxu2 %v381_v21 }
  0xb3   : > { %429 = vmatpush.msra.mxu3 %v382_v24  ;;  %623 = vmatmul.msk.f32.vlgmr.msra.gmra.mxu2 %vm390_vm4, %v383_v23 }
  0xb4   : > { %624 = vmatmul.msk.f32.vlgmr.msra.gmra.mxu3 %vm390_vm4, %v383_v23 }
 0x136   : > { %v411_v27 = vpop.f32.mrf.mxu2 }
 0x137   : > { %v412_v28 = vadd.f32 %v411_v27, %v388_v26  ;;  %v431_v29 = vpop.f32.mrf.mxu3 }
 0x138   : > { %v432_v30 = vadd.f32 %v431_v29, %v388_v26 }
 0x139   : > { %v436_v31 = vmul.f32 1.442695, %v412_v28  ;;  %vm434_vm5 = vcmp.gt.f32.partialorder %v412_v28, 0.0 }
 0x13a   : > { %v438_v32 = vmul.f32 1.442695, %v432_v30  ;;  %vm435_vm6 = vcmp.gt.f32.partialorder %v432_v30, 0.0 }
 0x13b   : > { %700 = vpow2.f32 %v436_v31 }
 0x13c   : > { %702 = vpow2.f32 %v438_v32 }
 0x141   : > { %v701_v33 = vpop.eup %700 }
 0x142   : > { %v703_v34 = vpop.eup %702  ;;  %v625_v35 = vadd.f32 -1.0, %v701_v33 }
 0x143   : > { %v626_v36 = vadd.f32 -1.0, %v703_v34 }
 0x144   : > { %v442_v37 = vmul.f32 1.6732632, %v625_v35 }
 0x145   : > { %v443_v38 = vmul.f32 1.6732632, %v626_v36 }
 0x146   : > { %v444_v39 = vsel %vm434_vm5, %v412_v28, %v442_v37 }
 0x147   : > { %v446_v40 = vmul.f32 1.050701, %v444_v39  ;;  %v445_v41 = vsel %vm435_vm6, %v432_v30, %v443_v38 }
 0x148   : > { %v447_v43 = vmul.f32 1.050701, %v445_v41 }
 0x149   : > { %473 = vmatpush.msrb.mxu0 %v446_v40 }
 0x14a   : > { %493 = vmatpush.msrb.mxu1 %v447_v43  ;;  %627 = vmatmul.msk.f32.vlgmr.msrb.gmra.mxu0 %vm390_vm4, %v448_v42 }
 0x14b   : > { %628 = vmatmul.msk.f32.vlgmr.msrb.gmra.mxu1 %vm390_vm4, %v448_v42 }
 0x1c7   : > { %v475_v45 = vpop.f32.mrf.mxu0 }
 0x1c8   : > { %v476_v46 = vadd.f32 %v475_v45, %v453_v44  ;;  %v495_v47 = vpop.f32.mrf.mxu1 }
 0x1c9   : > { %v496_v48 = vadd.f32 %v495_v47, %v453_v44 }
 0x1ca   : > { %v500_v49 = vmul.f32 1.442695, %v476_v46  ;;  %vm498_vm7 = vcmp.gt.f32.partialorder %v476_v46, 0.0 }
 0x1cb   : > { %v502_v50 = vmul.f32 1.442695, %v496_v48  ;;  %vm499_vm8 = vcmp.gt.f32.partialorder %v496_v48, 0.0 }
 0x1cc   : > { %704 = vpow2.f32 %v500_v49 }
 0x1cd   : > { %706 = vpow2.f32 %v502_v50 }
 0x1d2   : > { %v705_v51 = vpop.eup %704 }
 0x1d3   : > { %v707_v52 = vpop.eup %706  ;;  %v629_v53 = vadd.f32 -1.0, %v705_v51 }
 0x1d4   : > { %v630_v54 = vadd.f32 -1.0, %v707_v52 }
 0x1d5   : > { %v506_v55 = vmul.f32 1.6732632, %v629_v53 }
 0x1d6   : > { %v507_v56 = vmul.f32 1.6732632, %v630_v54 }
 0x1d7   : > { %v508_v57 = vsel %vm498_vm7, %v476_v46, %v506_v55 }
 0x1d8   : > { %v510_v58 = vmul.f32 1.050701, %v508_v57  ;;  %v509_v59 = vsel %vm499_vm8, %v496_v48, %v507_v56 }
 0x1d9   : > { %v511_v60 = vmul.f32 1.050701, %v509_v59 }
 0x1da   : > { %512 = vst [vmem:[%s296_s8] sm:$0xff] %v510_v58 }
 0x1db   : > { %513 = vst [vmem:[%s296_s8 + $0x8] sm:$0xff] %v511_v60 }
 0x1dc   : > { %735 = shalt.err (!%p732_p5)
}
 0x1dd   : > { %638 = dma.vmem_to_hbm [thread:$0]  (%p869_p4), %s531_s10, 256, %s533_s12, %s515_s27  }
 0x1de PF: > { %p644_p6 = scmp.ge.s32.totalorder %s786_s29, 2  ;;  %s544_s19 = sand.u32 1, %s766_s24  }
 0x1df   : > { %s545_s23 = scalar_lea.sflag [#allocation3], %s544_s19 }
 0x1e0   : > { %p641_p7 = pnand %p644_p6, %p876_p8 }
 0x1e2   : > { %p642_p9 = pneg %p641_p7 }
 0x1e4   : > { %761 = dma.done.wait (%p642_p9), %s545_s23, 256  }
 0x1e5   : > { %763 = vsyncadd (%p642_p9), %s545_s23, 4294967040  ;;  %s20_s29 = sadd.s32 1, %s786_s29   ;;  %s958_s24 = smov %s770_s25 }
 0x1e6   : > { %p17_p10 = scmp.ge.s32.totalorder %s20_s29, 4   ;;  %s959_s25 = smov %s774_s26 }
 0x1e7   : > { %s960_s26 = smov %s882_s14  ;;  %s961_s27 = smov %s782_s28 }
 0x1e8   : > { %s962_s28 = smov %s964_s9  ;;  %19 = sbr.rel (!%p17_p10) target bundleno = 4 (0x4), region = 83 }
 0x1ed   :  { %551 = vsyncpa [#allocation3], 1 }
 0x1ee   :  { %553 = vsyncpa [#allocation3 + $0x1], 1 }

</bundles_post_ra>
